<compile_context>
chip_gen: v5e
topology: v5e:2x2
jax: 0.10.0
libtpu: 0.0.40
codegen_flags: <defaults>
</compile_context>

<pallas_src>
import functools

import jax
import jax.numpy as jnp
import numpy as np
from jax.experimental import pallas as pl
from jax.experimental.pallas import tpu as pltpu

EPS = 1e-5
NEG_SLOPE = 0.01          # nn.LeakyReLU() default
LANE = 128
SUBLANE = 8
MXU_DTYPE = jnp.bfloat16  # matmul operand dtype (f32 accumulation)


def _round_up(x, m):
    return (x + m - 1) // m * m


# --------------------------------------------------------------------------
# Pass 1: partial BN1 statistics of h = x @ w1 (padded rows of x are zero and
# biases are dropped, so they contribute exactly 0 to sum / sumsq).
# --------------------------------------------------------------------------
def _stats1_kernel(x_ref, w1_ref, stats_ref):
    h = jnp.dot(x_ref[...].astype(MXU_DTYPE), w1_ref[...],
                preferred_element_type=jnp.float32)
    s = jnp.sum(h, axis=0, keepdims=True)          # (1, H_p)
    ss = jnp.sum(h * h, axis=0, keepdims=True)     # (1, H_p)
    stats_ref[:, 0:1, :] = s[None]
    stats_ref[:, 1:2, :] = ss[None]


# --------------------------------------------------------------------------
# Pass 2: recompute h, apply BN1 (fused scale/shift) + LeakyReLU, l2 matmul
# + residual, write y and partial BN2 statistics.
# --------------------------------------------------------------------------
def _mid_kernel(*refs, tn, n_valid, identity_res):
    if identity_res:
        x_ref, w1_ref, w2_ref, ss1_ref, y_ref, stats_ref = refs
        wr_ref = None
    else:
        x_ref, w1_ref, w2_ref, wr_ref, ss1_ref, y_ref, stats_ref = refs

    x = x_ref[...]                                  # (tn, Di_eff) f32
    xb = x.astype(MXU_DTYPE)

    # l1 (bias folded away by BN1 mean subtraction)
    h = jnp.dot(xb, w1_ref[...], preferred_element_type=jnp.float32)

    # BN1 apply (one FMA) + LeakyReLU
    a = h * ss1_ref[0:1, :] + ss1_ref[1:2, :]
    a = jnp.where(a >= 0, a, NEG_SLOPE * a)

    # zero the padded token rows so they do not pollute the BN2 statistics
    if n_valid is not None:
        row = pl.program_id(0) * tn + jax.lax.broadcasted_iota(
            jnp.int32, (tn, 1), 0)
        a = jnp.where(row < n_valid, a, 0.0)

    # l2 + residual (identity residual is a plain add, no eye-matmul)
    y = jnp.dot(a.astype(MXU_DTYPE), w2_ref[...],
                preferred_element_type=jnp.float32)
    if identity_res:
        y = y + x
    else:
        y = y + jnp.dot(xb, wr_ref[...], preferred_element_type=jnp.float32)

    y_ref[...] = y

    s = jnp.sum(y, axis=0, keepdims=True)           # (1, Do_p)
    ss = jnp.sum(y * y, axis=0, keepdims=True)      # (1, Do_p)
    stats_ref[:, 0:1, :] = s[None]
    stats_ref[:, 1:2, :] = ss[None]


# --------------------------------------------------------------------------
# Pass 3: apply BN2 (fused scale/shift) + final LeakyReLU.
# --------------------------------------------------------------------------
def _out_kernel(y_ref, ss2_ref, o_ref):
    y = y_ref[...] * ss2_ref[0:1, :] + ss2_ref[1:2, :]
    o_ref[...] = jnp.where(y >= 0, y, NEG_SLOPE * y)


def _bn_scale_shift(stats_partial, gamma_p, beta_p, n):
    """Combine per-tile (sum, sumsq) partials into fused BN scale/shift (2, C)."""
    s = jnp.sum(stats_partial, axis=0)                       # (2, C_p)
    mean = s[0:1, :] / n
    var = jnp.maximum(s[1:2, :] / n - mean * mean, 0.0)      # single-pass var
    scale = gamma_p * jax.lax.rsqrt(var + EPS)
    shift = beta_p - mean * scale
    return jnp.concatenate([scale, shift], axis=0)           # (2, C_p)


def mix_forward(x, params, tn=512):
    """x: (B, T, d_input) f32 -> (B, T, d_output) f32 (training-mode BatchNorm)."""
    w1, b1, w2, b2, wr, br, g1, be1, g2, be2 = params
    del b1, b2, br   # linear biases cancel exactly under BN mean subtraction

    B, T, Di = x.shape
    H = w1.shape[1]
    Do = w2.shape[1]
    identity_res = wr is None                      # nn.Identity() residual

    N = B * T
    H_p = _round_up(H, LANE)
    Do_p = _round_up(Do, LANE)
    # x is only padded in the lane dim when it is reused directly as the residual
    Di_eff = Do_p if identity_res else Di

    tn = max(SUBLANE, min(_round_up(tn, SUBLANE), _round_up(N, SUBLANE)))
    N_pad = _round_up(N, tn)
    nt = N_pad // tn
    n_valid = N if N_pad != N else None

    x2 = jnp.pad(x.reshape(N, Di), ((0, N_pad - N), (0, Di_eff - Di)))
    w1p = jnp.pad(w1, ((0, Di_eff - Di), (0, H_p - H))).astype(MXU_DTYPE)
    w2p = jnp.pad(w2, ((0, H_p - H), (0, Do_p - Do))).astype(MXU_DTYPE)
    g1p = jnp.pad(g1, ((0, 0), (0, H_p - H)))
    be1p = jnp.pad(be1, ((0, 0), (0, H_p - H)))
    g2p = jnp.pad(g2, ((0, 0), (0, Do_p - Do)))
    be2p = jnp.pad(be2, ((0, 0), (0, Do_p - Do)))

    cparams = pltpu.CompilerParams(
        dimension_semantics=("parallel",),      # tiles are independent -> megacore
        vmem_limit_bytes=48 * 1024 * 1024,      # > v5e 16MiB default, < v7x 64MiB physical
    )

    # ---- pass 1: BN1 statistics -----------------------------------------
    stats1 = pl.pallas_call(
        _stats1_kernel,
        grid=(nt,),
        in_specs=[pl.BlockSpec((tn, Di_eff), lambda i: (i, 0)),
                  pl.BlockSpec((Di_eff, H_p), lambda i: (0, 0))],
        out_specs=pl.BlockSpec((1, 2, H_p), lambda i: (i, 0, 0)),
        out_shape=jax.ShapeDtypeStruct((nt, 2, H_p), jnp.float32),
        compiler_params=cparams,
    )(x2, w1p)
    ss1 = _bn_scale_shift(stats1, g1p, be1p, N)

    # ---- pass 2: BN1 apply + act + l2 + residual + BN2 statistics --------
    kernel2 = functools.partial(_mid_kernel, tn=tn, n_valid=n_valid,
                                identity_res=identity_res)
    in_specs2 = [pl.BlockSpec((tn, Di_eff), lambda i: (i, 0)),
                 pl.BlockSpec((Di_eff, H_p), lambda i: (0, 0)),
                 pl.BlockSpec((H_p, Do_p), lambda i: (0, 0))]
    args2 = [x2, w1p, w2p]
    if not identity_res:
        wrp = jnp.pad(wr, ((0, 0), (0, Do_p - Do))).astype(MXU_DTYPE)
        in_specs2.append(pl.BlockSpec((Di, Do_p), lambda i: (0, 0)))
        args2.append(wrp)
    in_specs2.append(pl.BlockSpec((2, H_p), lambda i: (0, 0)))
    args2.append(ss1)

    y_pad, stats2 = pl.pallas_call(
        kernel2,
        grid=(nt,),
        in_specs=in_specs2,
        out_specs=(pl.BlockSpec((tn, Do_p), lambda i: (i, 0)),
                   pl.BlockSpec((1, 2, Do_p), lambda i: (i, 0, 0))),
        out_shape=(jax.ShapeDtypeStruct((N_pad, Do_p), jnp.float32),
                   jax.ShapeDtypeStruct((nt, 2, Do_p), jnp.float32)),
        compiler_params=cparams,
    )(*args2)
    ss2 = _bn_scale_shift(stats2, g2p, be2p, N)

    # ---- pass 3: BN2 apply + final LeakyReLU -----------------------------
    out_pad = pl.pallas_call(
        _out_kernel,
        grid=(nt,),
        in_specs=[pl.BlockSpec((tn, Do_p), lambda i: (i, 0)),
                  pl.BlockSpec((2, Do_p), lambda i: (0, 0))],
        out_specs=pl.BlockSpec((tn, Do_p), lambda i: (i, 0)),
        out_shape=jax.ShapeDtypeStruct((N_pad, Do_p), jnp.float32),
        compiler_params=cparams,
    )(y_pad, ss2)

    return out_pad[:N, :Do].reshape(B, T, Do)


def make_params(key, d_input, d_output, d_hidden):
    """Synthetic parameters. Linear weights stored transposed as (d_in, d_out)."""
    ks = jax.random.split(key, 10)
    w1 = 0.1 * jax.random.normal(ks[0], (d_input, d_hidden), jnp.float32)
    b1 = 0.1 * jax.random.normal(ks[1], (1, d_hidden), jnp.float32)
    w2 = 0.1 * jax.random.normal(ks[2], (d_hidden, d_output), jnp.float32)
    b2 = 0.1 * jax.random.normal(ks[3], (1, d_output), jnp.float32)
    if d_input == d_output:
        wr, br = None, None                     # self.res = nn.Identity()
    else:
        wr = 0.1 * jax.random.normal(ks[4], (d_input, d_output), jnp.float32)
        br = 0.1 * jax.random.normal(ks[5], (1, d_output), jnp.float32)
    # BatchNorm affine params (perturbed from the PyTorch init weight=1/bias=0
    # so the fused scale/shift path is actually exercised)
    g1 = 1.0 + 0.1 * jax.random.normal(ks[6], (1, d_hidden), jnp.float32)
    be1 = 0.1 * jax.random.normal(ks[7], (1, d_hidden), jnp.float32)
    g2 = 1.0 + 0.1 * jax.random.normal(ks[8], (1, d_output), jnp.float32)
    be2 = 0.1 * jax.random.normal(ks[9], (1, d_output), jnp.float32)
    return (w1, b1, w2, b2, wr, br, g1, be1, g2, be2)


def mix_reference(x, params):
    """Pure-JAX reference mirroring the PyTorch forward (training-mode BN, with
    biases).  Matmul operands are cast to bf16 to match the kernel's MXU
    precision; everything else stays f32."""
    w1, b1, w2, b2, wr, br, g1, be1, g2, be2 = params
    B, T, Di = x.shape
    x2 = x.reshape(B * T, Di)
    bf = MXU_DTYPE
    h = jnp.dot(x2.astype(bf), w1.astype(bf),
                preferred_element_type=jnp.float32) + b1
    m = h.mean(0, keepdims=True)
    v = ((h - m) ** 2).mean(0, keepdims=True)
    h = (h - m) / jnp.sqrt(v + EPS) * g1 + be1
    a = jnp.where(h >= 0, h, NEG_SLOPE * h)
    if wr is None:
        res = x2
    else:
        res = jnp.dot(x2.astype(bf), wr.astype(bf),
                      preferred_element_type=jnp.float32) + br
    y = res + jnp.dot(a.astype(bf), w2.astype(bf),
                      preferred_element_type=jnp.float32) + b2
    m2 = y.mean(0, keepdims=True)
    v2 = ((y - m2) ** 2).mean(0, keepdims=True)
    y = (y - m2) / jnp.sqrt(v2 + EPS) * g2 + be2
    y = jnp.where(y >= 0, y, NEG_SLOPE * y)
    return y.reshape(B, T, -1)


if __name__ == "__main__":
    key = jax.random.PRNGKey(0)

    # Case 1: d_input != d_output (Linear residual); tn=8 -> 2-tile parallel grid.
    k1, k2, key = jax.random.split(key, 3)
    B, T, d_in, d_hid, d_out = 2, 8, 16, 64, 32
    x = jax.random.normal(k1, (B, T, d_in), jnp.float32)
    params = make_params(k2, d_in, d_out, d_hid)
    out = jax.block_until_ready(mix_forward(x, params, tn=8))
    ref = mix_reference(x, params)
    np.testing.assert_allclose(np.asarray(out), np.asarray(ref),
                               rtol=1e-3, atol=1e-3)

    # Case 2: d_input == d_output (Identity residual) with a ragged token count
    # (exercises the padded-row mask path and the identity-add specialization).
    k3, k4, key = jax.random.split(key, 3)
    B, T, d_in, d_hid, d_out = 2, 7, 32, 48, 32
    x = jax.random.normal(k3, (B, T, d_in), jnp.float32)
    params = make_params(k4, d_in, d_out, d_hid)
    out = jax.block_until_ready(mix_forward(x, params))
    ref = mix_reference(x, params)
    np.testing.assert_allclose(np.asarray(out), np.asarray(ref),
                               rtol=1e-3, atol=1e-3)

    print("KERNEL_OK")
</pallas_src>

<mosaic_0001>
module attributes {stable_mosaic.version = 11 : i64} {
  func.func @_stats1_kernel(%arg0: i32, %arg1: memref<8x16xf32, #tpu.memory_space<vmem>>, %arg2: memref<16x128xbf16, #tpu.memory_space<vmem>>, %arg3: memref<1x2x128xf32, #tpu.memory_space<vmem>>) attributes {dimension_semantics = [#tpu.dimension_semantics<parallel>], iteration_bounds = array<i64: 2>, scalar_prefetch = 0 : i64, scratch_operands = 0 : i64, tpu.core_type = #tpu.core_type<tc>, window_params = [{transform_indices = @transform_0, window_bounds = array<i64: 8, 16>}, {pipeline_mode = #tpu.pipeline_mode<synchronous>, transform_indices = @transform_1, window_bounds = array<i64: 16, 128>}, {transform_indices = @transform_2, window_bounds = array<i64: 1, 2, 128>}]} {
    %c0 = arith.constant 0 : index
    %c0_0 = arith.constant 0 : index
    %0 = vector.load %arg1[%c0, %c0_0] : memref<8x16xf32, #tpu.memory_space<vmem>>, vector<8x16xf32>
    %1 = arith.truncf %0 : vector<8x16xf32> to vector<8x16xbf16>
    %c0_1 = arith.constant 0 : index
    %c0_2 = arith.constant 0 : index
    %2 = vector.load %arg2[%c0_1, %c0_2] : memref<16x128xbf16, #tpu.memory_space<vmem>>, vector<16x128xbf16>
    %cst = arith.constant dense<0.000000e+00> : vector<8x128xf32>
    %3 = tpu.matmul %1, %2, %cst {dimension_numbers = #tpu.dot_dimension_numbers<[1], [0], [0], [1], [0, 0, 1, 1], [], []>} : vector<8x16xbf16>, vector<16x128xbf16>, vector<8x128xf32> -> vector<8x128xf32>
    %cst_3 = arith.constant dense<0.000000e+00> : vector<128xf32>
    %4 = vector.multi_reduction <add>, %3, %cst_3 [0] : vector<8x128xf32> to vector<128xf32>
    %5 = vector.shape_cast %4 : vector<128xf32> to vector<1x128xf32>
    %6 = arith.mulf %3, %3 : vector<8x128xf32>
    %cst_4 = arith.constant dense<0.000000e+00> : vector<128xf32>
    %7 = vector.multi_reduction <add>, %6, %cst_4 [0] : vector<8x128xf32> to vector<128xf32>
    %8 = vector.shape_cast %7 : vector<128xf32> to vector<1x128xf32>
    %9 = vector.shape_cast %5 : vector<1x128xf32> to vector<1x1x128xf32>
    %c0_5 = arith.constant 0 : index
    %c0_6 = arith.constant 0 : index
    %c0_7 = arith.constant 0 : index
    %10 = vector.load %arg3[%c0_5, %c0_6, %c0_7] : memref<1x2x128xf32, #tpu.memory_space<vmem>>, vector<1x1x128xf32>
    tpu.vector_store %arg3[%c0_5, %c0_6, %c0_7], %9 {strides = array<i32>} : memref<1x2x128xf32, #tpu.memory_space<vmem>>, vector<1x1x128xf32>,
    %11 = vector.shape_cast %8 : vector<1x128xf32> to vector<1x1x128xf32>
    %c0_8 = arith.constant 0 : index
    %c1 = arith.constant 1 : index
    %c0_9 = arith.constant 0 : index
    %12 = vector.load %arg3[%c0_8, %c1, %c0_9] : memref<1x2x128xf32, #tpu.memory_space<vmem>>, vector<1x1x128xf32>
    tpu.vector_store %arg3[%c0_8, %c1, %c0_9], %11 {strides = array<i32>} : memref<1x2x128xf32, #tpu.memory_space<vmem>>, vector<1x1x128xf32>,
    return
  }
  func.func @transform_0(%arg0: i32) -> (i32, i32) {
    %c0_i32 = arith.constant 0 : i32
    %c0_i32_0 = arith.constant 0 : i32
    return %arg0, %c0_i32 : i32, i32
  }
  func.func @transform_1(%arg0: i32) -> (i32, i32) {
    %c0_i32 = arith.constant 0 : i32
    %c0_i32_0 = arith.constant 0 : i32
    %c0_i32_1 = arith.constant 0 : i32
    return %c0_i32, %c0_i32_0 : i32, i32
  }
  func.func @transform_2(%arg0: i32) -> (i32, i32, i32) {
    %c0_i32 = arith.constant 0 : i32
    %c0_i32_0 = arith.constant 0 : i32
    %c0_i32_1 = arith.constant 0 : i32
    return %arg0, %c0_i32, %c0_i32_0 : i32, i32, i32
  }
}

</mosaic_0001>

<bundles_post_ra>
// kernel: tpu_custom_call.1
= control target key start
LH: loop header
LB: loop body
LE: loop exit
PB: predicated region body
PF: predicated region fallthrough
CT: control target
= control target key end

     0   :  { %7 = vsyncpa [#allocation3], 0  ;;  %s683_s0 = inlined_call_operand.hbm [shape: f32[16,16], index: 0, kind: input, shape index: {}]   ;;  %s684_s1 = inlined_call_operand.hbm [shape: bf16[16,128], index: 1, kind: input, shape index: {}]   ;;  %s685_s2 = inlined_call_operand.hbm [shape: f32[2,2,128], index: 2, kind: output, shape index: {}]  }
   0x1   :  { %9 = vsyncpa [#allocation3 + $0x1], 0 }
   0x2   :  { %10 = vsyncpa [#allocation6], 0 }
   0x3   :  { %11 = vsyncpa [#allocation4], 0 }
   0x4   :  { %13 = vsyncpa [#allocation4 + $0x1], 0  ;;  %s546_s9 = smov 0   ;;  %s548_s10 = smov 0  }
   0x5   :  { %s550_s11 = smov 0   ;;  %s552_s12 = smov 0  }
   0x6 LB: > { %s108_s15 = sshll.u32 %s684_s1, 4  ;;  %s570_s16 = sadd.s32 4294967295, %s526_s12   ;;  %s526_s12 = sphi %s552_s12, %s695_s12   ;;  %s522_s11 = sphi %s550_s11, %s694_s11   ;;  %s518_s10 = sphi %s548_s10, %s693_s10   ;;  %s514_s9 = sphi %s546_s9, %s692_s9   ;;  %s109_s15 = int_to_ptr.hbm [resolvable:$true] %s108_s15 }
   0x7   : > { %p318_p0 = scmp.ge.s32.totalorder %s526_s12, 1  ;;  %p40_p1 = scmp.eq.s32.totalorder %s570_s16, 0 }
   0x8   : > { %p97_p2 = scmp.lt.s32.totalorder %s526_s12, 3  ;;  %s528_s18 = smov [#allocation5]  }
   0x9   : > { %s110_s19 = sshll.u32 %s528_s18, 4  ;;  %s529_s20 = smov 64   ;;  %s111_s19 = int_to_ptr.vmem [resolvable:$true] %s110_s19 }
   0xa   : > { %p575_p3 = pnand %p318_p0, %p97_p2  ;;  %s530_s21 = smov 4  }
   0xb   : > { %s317_s22 = sadd.s32 4294967294, %s526_s12   ;;  %s586_s23 = sadd.s32 1, %s526_s12  }
   0xc   : > { %p345_p4 = pneg %p575_p3  ;;  %s26_s24 = sadd.s32 1, %s522_s11 }
   0xd   : > { %s23_s25 = ssub.s32 %s526_s12, %s586_s23  ;;  %p33_p7 = scmp.ne.s32.totalorder %s522_s11, %s518_s10 }
   0xe   : > { %p346_p6 = pnand %p345_p4, %p40_p1  ;;  %p24_p8 = scmp.eq.s32.totalorder %s23_s25, 0 }
   0xf   : > { %p34_p9 = scmp.eq.s32.totalorder %s526_s12, 0  ;;  %p39_p10 = scmp.ne.s32.totalorder %s518_s10, %s514_s9 }
  0x10   : > { %348 = dma.hbm_to_vmem [thread:$0]  (!%p346_p6), %s109_s15, 128, %s111_s19, [#allocation6], %s529_s20, %s529_s20, %s530_s21  }
  0x11   : > { %p84_p11 = scmp.eq.s32.totalorder %s570_s16, 1  ;;  %p602_p12 = por %p40_p1, %p39_p10 }
  0x12   : > { %s598_s26 = scalar_select %p24_p8, %s522_s11, %s26_s24  }
  0x13   : > { %p606_p13 = por %p84_p11, %p33_p7  ;;  %p90_p0 = scmp.eq.s32.totalorder %s317_s22, 1 }
  0x14   : > { %p35_p2 = por %p34_p9, %p33_p7  ;;  %s124_s29 = sand.u32 1, %s522_s11  }
  0x15   : > { %p611_p4 = por %p90_p0, %p39_p10  ;;  %p358_p6 = scmp.lt.s32.totalorder %s526_s12, 2 }
  0x16   : > { %s321_s3 = sshll.u32 %s124_s29, 3  ;;  %s322_s4 = sshll.u32 %s526_s12, 3 }
  0x17   : > { %s132_s7 = scalar_lea.hbm %s683_s0, %s322_s4  ;;  %s128_s13 = scalar_lea.vmem [#allocation2], %s321_s3 }
  0x18   : > { %s134_s8 = sshll.u32 %s132_s7, 4  ;;  %s136_s14 = sshll.u32 %s128_s13, 4  ;;  %s135_s8 = int_to_ptr.hbm [resolvable:$true] %s134_s8  ;;  %s137_s14 = int_to_ptr.vmem [resolvable:$true] %s136_s14 }
  0x19   : > { %p620_p8 = pnand %p358_p6, %p35_p2  ;;  %s125_s18 = scalar_lea.sflag [#allocation3], %s124_s29 }
  0x1a   : > { %s426_s19 = sshra.s32 %s135_s8, 4  ;;  %s433_s24 = scalar_lea.hbm %s683_s0, 16  ;;  %s427_s19 = int_to_ptr.hbm [resolvable:$true] %s426_s19 }
  0x1b   : > { %s428_s20 = scalar_lea.hbm %s427_s19, 8  ;;  %p430_p9 = pneg %p620_p8 }
  0x1c   : > { %p429_p7 = scmp.ne.s32.totalorder %s427_s19, %s428_s20  ;;  %p434_p0 = scmp.lt.s32.totalorder %s427_s19, %s683_s0 }
  0x1d   : > { %p435_p2 = scmp.lt.s32.totalorder %s433_s24, %s428_s20 }
  0x1e   : > { %p431_p10 = pnand %p430_p9, %p429_p7 }
  0x1f   : > { %p436_p6 = por %p435_p2, %p434_p0 }
  0x20   : > { %p432_p11 = pneg %p431_p10 }
  0x22   : > { %p437_p5 = pnand %p436_p6, %p432_p11 }
  0x24   : > { %440 = shalt.err (!%p437_p5)
}
  0x25   : > { %352 = dma.hbm_to_vmem [thread:$0]  (!%p620_p8), %s135_s8, 128, %s137_s14, %s125_s18  }
  0x26   : > { %145 = sbr.rel (%p575_p3) target bundleno = 193 (0xc1), region = 28  ;;  %s637_s29 = sand.u32 (!%p575_p3), 1, %s518_s10  }
  0x27   : > { %s324_s4 = sshll.u32 (!%p575_p3), %s637_s29, 3  ;;  %s148_s5 = scalar_lea.sflag (!%p575_p3), [#allocation3], %s637_s29 }
  0x28   : > { %s151_s6 = scalar_lea.vmem (!%p575_p3), [#allocation2], %s324_s4 }
  0x2b   : > { %501 = dma.done.wait (%p602_p12), %s148_s5, 128  }
  0x2c   : > { %503 = vsyncadd (%p602_p12), %s148_s5, 4294967168 }
  0x2d   : > { %505 = dma.done.wait (%p40_p1), [#allocation6], 128  }
  0x2e   : > { %507 = vsyncadd (%p40_p1), [#allocation6], 4294967168  ;;  %v336_v0 = vld [vmem:[#allocation5] sm:$0xff]  ;;  %v179_v1 = vld [vmem:[%s151_s6] sm:$0xff]  ;;  %vm189_vm0 = vcmask 130048   ;;  %s326_s17 = sshll.u32 %s637_s29, 1 }
  0x2f   : > { %v180_v2 = vpack.c.bf16 %v179_v1, %v179_v1  ;;  %200 = vmatpush.bf16.msra.mxu0 %v336_v0  ;;  %s333_s27 = sshll.u32 %s570_s16, 1  ;;  %s177_s14 = scalar_lea.vmem [#allocation7], %s326_s17 }
  0x30   : > { %s232_s13 = scalar_lea.hbm %s685_s2, %s333_s27  ;;  %s234_s15 = sshll.u32 %s177_s14, 4  ;;  %s235_s15 = int_to_ptr.vmem [resolvable:$true] %s234_s15 }
  0x31   : > { %s236_s18 = sshll.u32 %s232_s13, 4  ;;  %s222_s16 = scalar_lea.sflag [#allocation4], %s637_s29  ;;  %s237_s18 = int_to_ptr.hbm [resolvable:$true] %s236_s18 }
  0x32   : > { %331 = vmatmul.msk.bf16.vlgmr.msra.gmra.mxu0 %vm189_vm0, %v180_v2  ;;  %s470_s19 = sshra.s32 %s237_s18, 4  ;;  %s476_s24 = scalar_lea.hbm %s685_s2, 4  ;;  %s471_s19 = int_to_ptr.hbm [resolvable:$true] %s470_s19 }
  0x33   : > { %s472_s20 = scalar_lea.hbm %s471_s19, 2  ;;  %p477_p12 = scmp.lt.s32.totalorder %s471_s19, %s685_s2 }
  0x34   : > { %p473_p1 = scmp.ne.s32.totalorder %s471_s19, %s472_s20  ;;  %p478_p8 = scmp.lt.s32.totalorder %s476_s24, %s472_s20 }
  0x36   : > { %p474_p3 = pnand %p473_p1, %p606_p13  ;;  %p479_p7 = por %p478_p8, %p477_p12 }
  0x38   : > { %p475_p5 = pneg %p474_p3 }
  0x3a   : > { %p480_p9 = pnand %p479_p7, %p475_p5 }
  0xaf   : > { %v202_v3 = vpop.f32.mrf.mxu0 }
  0xb0   : > { %v206_v4 = vrot.slane %v202_v3, 4  ;;  %v212_v5 = vmul.f32 %v202_v3, %v202_v3 }
  0xb2   : > { %v207_v6 = vadd.f32 %v206_v4, %v202_v3  ;;  %v213_v7 = vrot.slane %v212_v5, 4 }
  0xb4   : > { %v208_v8 = vrot.slane %v207_v6, 2  ;;  %v214_v9 = vadd.f32 %v213_v7, %v212_v5 }
  0xb6   : > { %v209_v10 = vadd.f32 %v208_v8, %v207_v6  ;;  %v215_v11 = vrot.slane %v214_v9, 2 }
  0xb7   : > { %v204_v12 = vpop.f32.mrf.mxu0 }
  0xb8   : > { %v210_v13 = vrot.slane %v209_v10, 1  ;;  %v216_v14 = vadd.f32 %v215_v11, %v214_v9 }
  0xba   : > { %v211_v15 = vadd.f32 %v210_v13, %v209_v10  ;;  %v217_v16 = vrot.slane %v216_v14, 1 }
  0xbc   : > { %v218_v17 = vadd.f32 %v217_v16, %v216_v14  ;;  %219 = vst [vmem:[%s177_s14] sm:$0x1] %v211_v15 }
  0xbe   : > { %220 = vst [vmem:[%s177_s14 + $0x1] sm:$0x1] %v218_v17 }
  0xbf   : > { %483 = shalt.err (!%p480_p9)
}
  0xc0   : > { %343 = dma.vmem_to_hbm [thread:$0]  (%p606_p13), %s235_s15, 32, %s237_s18, %s222_s16  }
  0xc1 PF: > { %s248_s29 = sand.u32 1, %s514_s9   ;;  %p691_p10 = scmp.ge.s32.totalorder %s526_s12, 2 }
  0xc2   : > { %s249_s4 = scalar_lea.sflag [#allocation4], %s248_s29 }
  0xc3   : > { %p354_p11 = pnand %p691_p10, %p611_p4 }
  0xc5   : > { %p355_p0 = pneg %p354_p11 }
  0xc7   : > { %509 = dma.done.wait (%p355_p0), %s249_s4, 32  }
  0xc8   : > { %511 = vsyncadd (%p355_p0), %s249_s4, 4294967264  ;;  %p16_p2 = scmp.ge.s32.totalorder %s586_s23, 4   ;;  %s692_s9 = smov %s518_s10 }
  0xc9   : > { %s693_s10 = smov %s522_s11  ;;  %s694_s11 = smov %s598_s26 }
  0xca   : > { %s695_s12 = smov %s586_s23  ;;  %18 = sbr.rel (!%p16_p2) target bundleno = 6 (0x6), region = 77 }
  0xcf   :  { %255 = vsyncpa [#allocation3], 1 }
  0xd0   :  { %257 = vsyncpa [#allocation3 + $0x1], 1 }
  0xd1   :  { %258 = vsyncpa [#allocation6], 1 }
  0xd2   :  { %259 = vsyncpa [#allocation4], 1 }
  0xd3   :  { %261 = vsyncpa [#allocation4 + $0x1], 1 }

</bundles_post_ra>
